<compile_context>
chip_gen: v7x
topology: tpu7x:2x2x1
jax: 0.10.0
libtpu: 0.0.40
codegen_flags: <defaults>
</compile_context>

<pallas_src>
import functools
import math

import jax
import jax.numpy as jnp
import numpy as np
from jax.experimental import pallas as pl
from jax.experimental.pallas import tpu as pltpu


def _round_up(x, m):
    return ((x + m - 1) // m) * m


_GRID_MIN_B = 512      # switch to a batch-tiled grid at/above this padded batch
_GRID_BLOCK_B = 256    # batch tile for the gridded (large-B) path


# ----------------------------------------------------------------------------
# Pure-JAX sinusoidal embedding (reference path only) — matches
# layers.get_timestep_embedding from score_sde / DDPM.
# ----------------------------------------------------------------------------
def get_sinusoidal_positional_embedding(timesteps, embedding_dim, max_positions=10000):
    half_dim = embedding_dim // 2
    emb = math.log(max_positions) / max(half_dim - 1, 1)   # guard half_dim == 1
    emb = jnp.exp(jnp.arange(half_dim, dtype=jnp.float32) * -emb)
    emb = timesteps.astype(jnp.float32)[:, None] * emb[None, :]
    emb = jnp.concatenate([jnp.sin(emb), jnp.cos(emb)], axis=1)
    if embedding_dim % 2 == 1:
        emb = jnp.pad(emb, ((0, 0), (0, 1)))
    return emb


# ----------------------------------------------------------------------------
# Fused kernel:
#   temb = sinusoidal(t)                  (sin/cos on the otherwise-idle EUP)
#   out  = leaky_relu(temb @ w1 + b1, 0.2) @ w2 + b2
# ----------------------------------------------------------------------------
def _timestep_embedding_kernel(t_ref, freq_ref, sinsel_ref,
                               w1_ref, b1_ref, w2_ref, b2_ref, out_ref):
    B = t_ref.shape[0]
    E_pad = freq_ref.shape[1]

    t = jnp.broadcast_to(t_ref[...], (B, E_pad))          # (B,1) -> (B,E_pad)
    freq = jnp.broadcast_to(freq_ref[...], (B, E_pad))    # (1,E_pad) -> (B,E_pad)
    sel = jnp.broadcast_to(sinsel_ref[...], (B, E_pad)) > 0.5

    arg = t * freq
    # Padding / odd-dim lanes: freq == 0 and sel == True -> sin(0) == 0.
    temb = jnp.where(sel, jnp.sin(arg), jnp.cos(arg))

    h = jnp.dot(temb, w1_ref[...], preferred_element_type=jnp.float32) + b1_ref[...]
    h = jnp.maximum(h, 0.2 * h)                            # LeakyReLU(0.2)
    y = jnp.dot(h, w2_ref[...], preferred_element_type=jnp.float32) + b2_ref[...]
    out_ref[...] = y.astype(out_ref.dtype)


def _timestep_embedding_mlp_padded(t_pad, freq, sinsel, w1p, b1p, w2p, b2p):
    """Runs the fused kernel on pre-padded operands; returns (B_pad, O_pad)."""
    B_pad = t_pad.shape[0]
    E_pad, H_pad = w1p.shape
    O_pad = w2p.shape[1]

    # Approximate VMEM footprint; raise the scoped limit only if the default
    # (v5e ~16 MiB, v6e/v7x ~32 MiB) would be exceeded by full residency.
    weight_bytes = 4 * (E_pad * H_pad + H_pad * O_pad + H_pad + O_pad + 2 * E_pad)
    act_bytes = 4 * B_pad * (E_pad + H_pad + O_pad + 1)
    approx_vmem = weight_bytes + 2 * act_bytes
    cp_kwargs = {}
    if approx_vmem > 12 * 1024 * 1024:
        cp_kwargs["vmem_limit_bytes"] = int(min(approx_vmem * 2, 100 * 1024 * 1024))

    out_shape = jax.ShapeDtypeStruct((B_pad, O_pad), jnp.float32)

    if B_pad < _GRID_MIN_B:
        # Gridless: whole (padded) operands resident in VMEM, no pipeline
        # overhead, no double-buffering of the (grid-invariant) weights.
        return pl.pallas_call(
            _timestep_embedding_kernel,
            out_shape=out_shape,
            in_specs=[pl.BlockSpec(memory_space=pltpu.MemorySpace.VMEM)] * 7,
            out_specs=pl.BlockSpec(memory_space=pltpu.MemorySpace.VMEM),
            compiler_params=pltpu.CompilerParams(**cp_kwargs),
        )(t_pad, freq, sinsel, w1p, b1p, w2p, b2p)

    # Large batch: 1-D "parallel" grid over B (uses both TCs on v7x).  Weight
    # BlockSpecs are grid-invariant (index_map -> (0, 0)) so they are not
    # re-DMA'd per block.
    bb = _GRID_BLOCK_B
    grid = (B_pad // bb,)
    return pl.pallas_call(
        _timestep_embedding_kernel,
        out_shape=out_shape,
        grid=grid,
        in_specs=[
            pl.BlockSpec((bb, 1), lambda i: (i, 0)),
            pl.BlockSpec((1, E_pad), lambda i: (0, 0)),
            pl.BlockSpec((1, E_pad), lambda i: (0, 0)),
            pl.BlockSpec((E_pad, H_pad), lambda i: (0, 0)),
            pl.BlockSpec((1, H_pad), lambda i: (0, 0)),
            pl.BlockSpec((H_pad, O_pad), lambda i: (0, 0)),
            pl.BlockSpec((1, O_pad), lambda i: (0, 0)),
        ],
        out_specs=pl.BlockSpec((bb, O_pad), lambda i: (i, 0)),
        compiler_params=pltpu.CompilerParams(
            dimension_semantics=("parallel",), **cp_kwargs),
    )(t_pad, freq, sinsel, w1p, b1p, w2p, b2p)


@functools.partial(jax.jit, static_argnums=(7, 8))
def _timestep_embedding_forward(timesteps, freq, sinsel, w1p, b1p, w2p, b2p,
                                output_dim, slice_output):
    B = timesteps.shape[0]
    B_pad8 = _round_up(max(B, 1), 8)
    B_pad = _round_up(B, _GRID_BLOCK_B) if B_pad8 >= _GRID_MIN_B else B_pad8
    t = jnp.pad(timesteps.astype(jnp.float32).reshape(B, 1),
                ((0, B_pad - B), (0, 0)))
    out = _timestep_embedding_mlp_padded(t, freq, sinsel, w1p, b1p, w2p, b2p)
    if slice_output:
        out = out[:B, :output_dim]          # fused inside this jit
    return out


# ----------------------------------------------------------------------------
# Module wrapper
# ----------------------------------------------------------------------------
class TimestepEmbedding:
    def __init__(self, embedding_dim, hidden_dim, output_dim, key,
                 max_positions=10000):
        self.embedding_dim = embedding_dim
        self.hidden_dim = hidden_dim
        self.output_dim = output_dim
        self.max_positions = max_positions

        k1, k2, k3, k4 = jax.random.split(key, 4)
        # nn.Linear-style uniform init; weights stored as (in, out).
        lim1 = 1.0 / math.sqrt(embedding_dim)
        lim2 = 1.0 / math.sqrt(hidden_dim)
        self.w1 = jax.random.uniform(k1, (embedding_dim, hidden_dim),
                                     jnp.float32, -lim1, lim1)
        self.b1 = jax.random.uniform(k2, (hidden_dim,), jnp.float32, -lim1, lim1)
        self.w2 = jax.random.uniform(k3, (hidden_dim, output_dim),
                                     jnp.float32, -lim2, lim2)
        self.b2 = jax.random.uniform(k4, (output_dim,), jnp.float32, -lim2, lim2)

        # ---- One-time prep (hoisted out of the per-call path) ---------------
        E_pad = _round_up(embedding_dim, 128)
        H_pad = _round_up(hidden_dim, 128)
        O_pad = _round_up(output_dim, 128)
        self._w1p = jnp.pad(self.w1, ((0, E_pad - embedding_dim),
                                      (0, H_pad - hidden_dim)))
        self._b1p = jnp.pad(self.b1.reshape(1, hidden_dim),
                            ((0, 0), (0, H_pad - hidden_dim)))
        self._w2p = jnp.pad(self.w2, ((0, H_pad - hidden_dim),
                                      (0, O_pad - output_dim)))
        self._b2p = jnp.pad(self.b2.reshape(1, output_dim),
                            ((0, 0), (0, O_pad - output_dim)))

        # Frequency row + sin/cos lane selector over E_pad lanes.
        # Lanes >= 2*half (incl. the odd-dim pad lane) get freq=0 with the
        # "sin" selector, so the kernel produces exactly 0 there.
        half = embedding_dim // 2
        scale = math.log(max_positions) / max(half - 1, 1)
        base = jnp.exp(jnp.arange(half, dtype=jnp.float32) * jnp.float32(-scale))
        freq_row = jnp.zeros((E_pad,), jnp.float32)
        freq_row = freq_row.at[:half].set(base).at[half:2 * half].set(base)
        col = np.arange(E_pad)
        sinsel = ((col < half) | (col >= 2 * half)).astype(np.float32)
        self._freq = freq_row.reshape(1, E_pad)
        self._sinsel = jnp.asarray(sinsel.reshape(1, E_pad))

    def __call__(self, temp, return_padded=False):
        """return_padded=True returns the lane-dense (B_pad, O_pad) slab so
        downstream consumers can avoid the slice entirely."""
        return _timestep_embedding_forward(
            temp, self._freq, self._sinsel,
            self._w1p, self._b1p, self._w2p, self._b2p,
            self.output_dim, not return_padded)

    def reference(self, temp):
        # Pure-JAX reference (matches the PyTorch module's forward).
        temb = get_sinusoidal_positional_embedding(temp, self.embedding_dim,
                                                   self.max_positions)
        h = temb @ self.w1 + self.b1
        h = jnp.where(h > 0, h, 0.2 * h)
        return h @ self.w2 + self.b2


if __name__ == "__main__":
    key = jax.random.PRNGKey(0)
    k_param, k_t1, k_t2 = jax.random.split(key, 3)

    embedding_dim, hidden_dim, output_dim = 32, 64, 32
    module = TimestepEmbedding(embedding_dim, hidden_dim, output_dim, k_param)

    # Small batch -> gridless, fully VMEM-resident path.
    batch = 8
    temp = jax.random.randint(k_t1, (batch,), 0, 1000).astype(jnp.float32)
    out = jax.block_until_ready(module(temp))
    ref = module.reference(temp)
    assert out.shape == (batch, output_dim)
    # Mosaic sin/cos vs XLA sin/cos can differ by a few ulps after range
    # reduction of ~1e3-magnitude arguments; tolerance is looser than fp32 eps.
    err = float(jnp.max(jnp.abs(out - ref)))
    assert err < 2e-3, f"small-batch mismatch vs reference: max abs err {err}"

    # Large batch -> 1-D 'parallel' grid over the batch (exercises tiled path).
    big_batch = 512
    temp_big = jax.random.randint(k_t2, (big_batch,), 0, 1000).astype(jnp.float32)
    out_big = jax.block_until_ready(module(temp_big))
    ref_big = module.reference(temp_big)
    assert out_big.shape == (big_batch, output_dim)
    err_big = float(jnp.max(jnp.abs(out_big - ref_big)))
    assert err_big < 2e-3, f"large-batch mismatch vs reference: max abs err {err_big}"

    print("KERNEL_OK")
</pallas_src>

<mosaic_0001>
module attributes {stable_mosaic.version = 11 : i64} {
  func.func @_timestep_embedding_kernel(%arg0: memref<8x1xf32, #tpu.memory_space<vmem>>, %arg1: memref<1x128xf32, #tpu.memory_space<vmem>>, %arg2: memref<1x128xf32, #tpu.memory_space<vmem>>, %arg3: memref<128x128xf32, #tpu.memory_space<vmem>>, %arg4: memref<1x128xf32, #tpu.memory_space<vmem>>, %arg5: memref<128x128xf32, #tpu.memory_space<vmem>>, %arg6: memref<1x128xf32, #tpu.memory_space<vmem>>, %arg7: memref<8x128xf32, #tpu.memory_space<vmem>>) attributes {dimension_semantics = [], scalar_prefetch = 0 : i64, scratch_operands = 0 : i64, tpu.core_type = #tpu.core_type<tc>} {
    %c0 = arith.constant 0 : index
    %c0_0 = arith.constant 0 : index
    %0 = vector.load %arg0[%c0, %c0_0] : memref<8x1xf32, #tpu.memory_space<vmem>>, vector<8x1xf32>
    %1 = vector.shape_cast %0 : vector<8x1xf32> to vector<8x1xf32>
    %2 = vector.broadcast %1 : vector<8x1xf32> to vector<8x128xf32>
    %c0_1 = arith.constant 0 : index
    %c0_2 = arith.constant 0 : index
    %3 = vector.load %arg1[%c0_1, %c0_2] : memref<1x128xf32, #tpu.memory_space<vmem>>, vector<1x128xf32>
    %4 = vector.shape_cast %3 : vector<1x128xf32> to vector<1x128xf32>
    %5 = vector.broadcast %4 : vector<1x128xf32> to vector<8x128xf32>
    %c0_3 = arith.constant 0 : index
    %c0_4 = arith.constant 0 : index
    %6 = vector.load %arg2[%c0_3, %c0_4] : memref<1x128xf32, #tpu.memory_space<vmem>>, vector<1x128xf32>
    %7 = vector.shape_cast %6 : vector<1x128xf32> to vector<1x128xf32>
    %8 = vector.broadcast %7 : vector<1x128xf32> to vector<8x128xf32>
    %cst = arith.constant 5.000000e-01 : f32
    %9 = vector.broadcast %cst : f32 to vector<8x128xf32>
    %10 = arith.cmpf ogt, %8, %9 : vector<8x128xf32>
    %11 = arith.mulf %2, %5 : vector<8x128xf32>
    %12 = math.sin %11 : vector<8x128xf32>
    %13 = math.cos %11 : vector<8x128xf32>
    %14 = arith.select %10, %12, %13 : vector<8x128xi1>, vector<8x128xf32>
    %c0_5 = arith.constant 0 : index
    %c0_6 = arith.constant 0 : index
    %15 = vector.load %arg3[%c0_5, %c0_6] : memref<128x128xf32, #tpu.memory_space<vmem>>, vector<128x128xf32>
    %cst_7 = arith.constant dense<0.000000e+00> : vector<8x128xf32>
    %16 = tpu.matmul %14, %15, %cst_7 {dimension_numbers = #tpu.dot_dimension_numbers<[1], [0], [0], [1], [0, 0, 1, 1], [], []>} : vector<8x128xf32>, vector<128x128xf32>, vector<8x128xf32> -> vector<8x128xf32>
    %c0_8 = arith.constant 0 : index
    %c0_9 = arith.constant 0 : index
    %17 = vector.load %arg4[%c0_8, %c0_9] : memref<1x128xf32, #tpu.memory_space<vmem>>, vector<1x128xf32>
    %18 = vector.broadcast %17 : vector<1x128xf32> to vector<8x128xf32>
    %19 = arith.addf %16, %18 : vector<8x128xf32>
    %cst_10 = arith.constant 2.000000e-01 : f32
    %20 = vector.broadcast %cst_10 : f32 to vector<8x128xf32>
    %21 = arith.mulf %20, %19 : vector<8x128xf32>
    %22 = arith.maximumf %19, %21 : vector<8x128xf32>
    %c0_11 = arith.constant 0 : index
    %c0_12 = arith.constant 0 : index
    %23 = vector.load %arg5[%c0_11, %c0_12] : memref<128x128xf32, #tpu.memory_space<vmem>>, vector<128x128xf32>
    %cst_13 = arith.constant dense<0.000000e+00> : vector<8x128xf32>
    %24 = tpu.matmul %22, %23, %cst_13 {dimension_numbers = #tpu.dot_dimension_numbers<[1], [0], [0], [1], [0, 0, 1, 1], [], []>} : vector<8x128xf32>, vector<128x128xf32>, vector<8x128xf32> -> vector<8x128xf32>
    %c0_14 = arith.constant 0 : index
    %c0_15 = arith.constant 0 : index
    %25 = vector.load %arg6[%c0_14, %c0_15] : memref<1x128xf32, #tpu.memory_space<vmem>>, vector<1x128xf32>
    %26 = vector.broadcast %25 : vector<1x128xf32> to vector<8x128xf32>
    %27 = arith.addf %24, %26 : vector<8x128xf32>
    %c0_16 = arith.constant 0 : index
    %c0_17 = arith.constant 0 : index
    %28 = vector.load %arg7[%c0_16, %c0_17] : memref<8x128xf32, #tpu.memory_space<vmem>>, vector<8x128xf32>
    tpu.vector_store %arg7[%c0_16, %c0_17], %27 {strides = array<i32>} : memref<8x128xf32, #tpu.memory_space<vmem>>, vector<8x128xf32>,
    return
  }
}

</mosaic_0001>

<bundles_post_ra>
// kernel: _timestep_embedding_forward.1
= control target key start
LH: loop header
LB: loop body
LE: loop exit
PB: predicated region body
PF: predicated region fallthrough
CT: control target
= control target key end

     0   :  { %12 = vsyncpa [#allocation3], 0  ;;  %s894_s0 = inlined_call_operand.vmem [shape: f32[8,1], index: 0, kind: input, shape index: {}]   ;;  %s895_s1 = inlined_call_operand.vmem [shape: f32[1,128], index: 1, kind: input, shape index: {}]   ;;  %s896_s2 = inlined_call_operand.vmem [shape: f32[1,128], index: 2, kind: input, shape index: {}]   ;;  %s897_s3 = inlined_call_operand.hbm [shape: f32[128,128], index: 3, kind: input, shape index: {}]   ;;  %s898_s4 = inlined_call_operand.vmem [shape: f32[1,128], index: 4, kind: input, shape index: {}]   ;;  %s899_s5 = inlined_call_operand.hbm [shape: f32[128,128], index: 5, kind: input, shape index: {}]   ;;  %s900_s6 = inlined_call_operand.vmem [shape: f32[1,128], index: 6, kind: input, shape index: {}]   ;;  %s901_s7 = inlined_call_operand.hbm [shape: f32[8,128], index: 7, kind: output, shape index: {}]  }
   0x1   :  { %13 = vsyncpa [#allocation6], 0 }
   0x2   :  { %14 = vsyncpa [#allocation4], 0  ;;  %s750_s24 = smov [#allocation2]   ;;  %s678_s28 = scalar_lea.hbm %s897_s3, 2048 }
   0x3   :  { %s26_s25 = sshll.u32 %s750_s24, 4  ;;  %p679_p0 = scmp.ne.s32.totalorder %s897_s3, %s678_s28  ;;  %s27_s25 = int_to_ptr.vmem [resolvable:$true] %s26_s25 }
   0x4   :  { %p682_p1 = scmp.lt.u32.totalorder %s678_s28, %s897_s3 }
   0x6   :  { %p684_p2 = pnand %p682_p1, %p679_p0 }
   0x8   :  { %687 = shalt.err (!%p684_p2)
}
   0x9   :  { %s688_s10 = scalar_lea.vmem %s27_s25, 2048  ;;  %p693_p4 = scmp.lt.s32.totalorder %s27_s25, %s27_s25 }
   0xa   :  { %p689_p3 = scmp.ne.s32.totalorder %s27_s25, %s688_s10  ;;  %p694_p5 = scmp.lt.s32.totalorder %s688_s10, %s688_s10 }
   0xc   :  { %p695_p6 = por %p694_p5, %p693_p4 }
   0xe   :  { %p696_p7 = pnand %p695_p6, %p689_p3 }
  0x10   :  { %699 = shalt.err (!%p696_p7)
}
  0x11   :  { %s751_s11 = smov 128   ;;  %s752_s12 = smov 8  }
  0x12   :  { %32 = dma.hbm_to_vmem [thread:$0]  %s897_s3, 2048, %s27_s25, [#allocation3], %s751_s11, %s751_s11, %s752_s12  }
  0x13   :  { %s753_s15 = smov [#allocation5]   ;;  %s700_s19 = scalar_lea.hbm %s899_s5, 2048 }
  0x14   :  { %s40_s16 = sshll.u32 %s753_s15, 4  ;;  %p701_p8 = scmp.ne.s32.totalorder %s899_s5, %s700_s19  ;;  %s41_s16 = int_to_ptr.vmem [resolvable:$true] %s40_s16 }
  0x15   :  { %p704_p9 = scmp.lt.u32.totalorder %s700_s19, %s899_s5 }
  0x17   :  { %p706_p10 = pnand %p704_p9, %p701_p8 }
  0x19   :  { %709 = shalt.err (!%p706_p10)
}
  0x1a   :  { %s710_s24 = scalar_lea.vmem %s41_s16, 2048  ;;  %p715_p12 = scmp.lt.s32.totalorder %s41_s16, %s41_s16 }
  0x1b   :  { %p711_p11 = scmp.ne.s32.totalorder %s41_s16, %s710_s24  ;;  %p716_p13 = scmp.lt.s32.totalorder %s710_s24, %s710_s24 }
  0x1d   :  { %p717_p0 = por %p716_p13, %p715_p12 }
  0x1f   :  { %p718_p1 = pnand %p717_p0, %p711_p11 }
  0x21   :  { %721 = shalt.err (!%p718_p1)
}
  0x22   :  { %46 = dma.hbm_to_vmem [thread:$0]  %s899_s5, 2048, %s41_s16, [#allocation6], %s751_s11, %s751_s11, %s752_s12  }
  0x23   :  { %744 = dma.done.wait [#allocation3], 2048  }
  0x24   :  { %745 = vsyncadd [#allocation3], 4294965248 }
  0x25   :  { %746 = dma.done.wait [#allocation6], 2048  }
  0x26   :  { %747 = vsyncadd [#allocation6], 4294965248  ;;  %v754_v0 = vmov 0   ;;  %v55_v1 = vld [vmem:[%s894_s0] sm:$0xff]  ;;  %v286_v3 = vld [vmem:[#allocation2 + $0x8] sm:$0xff]  ;;  %v755_v5 = vmov 0.0|0.0  }
  0x27   :  { %673 = vset.pattern.permute.xlu0 %v754_v0  ;;  %v285_v2 = vld [vmem:[#allocation2] sm:$0xff]  ;;  %606 = vmatprep.subr.bf16.mxu0 %v755_v5  ;;  %v287_v6 = vld [vmem:[#allocation2 + $0x10] sm:$0xff]  ;;  %v288_v7 = vld [vmem:[#allocation2 + $0x18] sm:$0xff]  ;;  %vm756_vm0 = vmmov 0   ;;  %v757_v20 = vmov 0.0   ;;  %s764_s9 = smov [#allocation7]  }
  0x28   :  { %58 = vperm.xlu0 %673, %v55_v1   ;;  %v607_v4 = vpack.c.bf16 %v286_v3, %v285_v2  ;;  %630 = vmatprep.subr.bf16.mxu1 %v755_v5  ;;  %v610_v8 = vpack.c.bf16 %v288_v7, %v287_v6  ;;  %v289_v9 = vld [vmem:[#allocation2 + $0x20] sm:$0xff]  ;;  %v290_v10 = vld [vmem:[#allocation2 + $0x28] sm:$0xff]  ;;  %v291_v12 = vld [vmem:[#allocation2 + $0x30] sm:$0xff]  ;;  %v758_v59 = vmov 683565275   ;;  %s480_s10 = sshll.u32 %s764_s9, 4  ;;  %s481_s10 = int_to_ptr.vmem [resolvable:$true] %s480_s10 }
  0x29   :  { %v613_v11 = vpack.c.bf16 %v290_v10, %v289_v9  ;;  %v292_v13 = vld [vmem:[#allocation2 + $0x38] sm:$0xff]  ;;  %v293_v15 = vld [vmem:[#allocation2 + $0x40] sm:$0xff]  ;;  %v294_v16 = vld [vmem:[#allocation2 + $0x48] sm:$0xff]  ;;  %568 = vmatprep.mubr.msk.f32.mxu0 %vm756_vm0, %v757_v20  ;;  %603 = vmatprep.mubr.msk.f32.mxu1 %vm756_vm0, %v757_v20  ;;  %v759_v61 = vmov 2475754826   ;;  %s722_s11 = scalar_lea.vmem %s481_s10, 128  ;;  %p727_p3 = scmp.lt.s32.totalorder %s481_s10, %s481_s10 }
  0x2a   :  { %608 = vmatpush3.bf16.msra.mxu0 %v607_v4  ;;  %v616_v14 = vpack.c.bf16 %v292_v13, %v291_v12  ;;  %v295_v17 = vld [vmem:[#allocation2 + $0x50] sm:$0xff]  ;;  %v619_v18 = vpack.c.bf16 %v294_v16, %v293_v15  ;;  %v296_v19 = vld [vmem:[#allocation2 + $0x58] sm:$0xff]  ;;  %v297_v22 = vld [vmem:[#allocation2 + $0x60] sm:$0xff]  ;;  %v760_v0 = vmov 2131351028   ;;  %p723_p2 = scmp.ne.s32.totalorder %s481_s10, %s722_s11  ;;  %p728_p4 = scmp.lt.s32.totalorder %s722_s11, %s722_s11 }
  0x2b   :  { %609 = vmatprep.subr.bf16.mxu0 %v755_v5  ;;  %v622_v21 = vpack.c.bf16 %v296_v19, %v295_v17  ;;  %v298_v23 = vld [vmem:[#allocation2 + $0x68] sm:$0xff]  ;;  %v299_v25 = vld [vmem:[#allocation2 + $0x70] sm:$0xff]  ;;  %v300_v26 = vld [vmem:[#allocation2 + $0x78] sm:$0xff]  ;;  %v761_v3 = vmov 2102212464  }
  0x2c   :  { %v625_v24 = vpack.c.bf16 %v298_v23, %v297_v22  ;;  %v628_v27 = vpack.c.bf16 %v300_v26, %v299_v25  ;;  %v380_v28 = vld [vmem:[#allocation5] sm:$0xff]  ;;  %v381_v29 = vld [vmem:[#allocation5 + $0x8] sm:$0xff]  ;;  %v382_v30 = vld [vmem:[#allocation5 + $0x10] sm:$0xff]  ;;  %v762_v7 = vmov 920167782   ;;  %p729_p5 = por %p728_p4, %p727_p3 }
  0x2d   :  { %v631_v31 = vpack.c.bf16 %v381_v29, %v380_v28  ;;  %v383_v32 = vld [vmem:[#allocation5 + $0x18] sm:$0xff]  ;;  %v384_v34 = vld [vmem:[#allocation5 + $0x20] sm:$0xff]  ;;  %v385_v35 = vld [vmem:[#allocation5 + $0x28] sm:$0xff]  ;;  %v763_v10 = vmov 1326507024  }
  0x2e   :  { %611 = vmatpush3.bf16.msra.mxu0 %v610_v8  ;;  %v634_v33 = vpack.c.bf16 %v383_v32, %v382_v30  ;;  %v637_v36 = vpack.c.bf16 %v385_v35, %v384_v34  ;;  %v386_v37 = vld [vmem:[#allocation5 + $0x30] sm:$0xff]  ;;  %v387_v38 = vld [vmem:[#allocation5 + $0x38] sm:$0xff]  ;;  %v388_v40 = vld [vmem:[#allocation5 + $0x40] sm:$0xff]  ;;  %p730_p6 = pnand %p729_p5, %p723_p2 }
  0x2f   :  { %612 = vmatprep.subr.bf16.mxu0 %v755_v5  ;;  %632 = vmatpush3.bf16.msra.mxu1 %v631_v31  ;;  %v640_v39 = vpack.c.bf16 %v387_v38, %v386_v37  ;;  %v389_v41 = vld [vmem:[#allocation5 + $0x48] sm:$0xff]  ;;  %v390_v43 = vld [vmem:[#allocation5 + $0x50] sm:$0xff]  ;;  %v391_v44 = vld [vmem:[#allocation5 + $0x58] sm:$0xff] }
  0x30   :  { %633 = vmatprep.subr.bf16.mxu1 %v755_v5  ;;  %v643_v42 = vpack.c.bf16 %v389_v41, %v388_v40  ;;  %v646_v45 = vpack.c.bf16 %v391_v44, %v390_v43  ;;  %v490_v46 = vld [vmem:[%s895_s1] ss:$0 sm:$0xff] }
  0x32   :  { %614 = vmatpush3.bf16.msra.mxu0 %v613_v11 }
  0x33   :  { %615 = vmatprep.subr.bf16.mxu0 %v755_v5  ;;  %635 = vmatpush3.bf16.msra.mxu1 %v634_v33 }
  0x34   :  { %636 = vmatprep.subr.bf16.mxu1 %v755_v5 }
  0x36   :  { %617 = vmatpush3.bf16.msra.mxu0 %v616_v14 }
  0x37   :  { %618 = vmatprep.subr.bf16.mxu0 %v755_v5  ;;  %638 = vmatpush3.bf16.msra.mxu1 %v637_v36 }
  0x38   :  { %639 = vmatprep.subr.bf16.mxu1 %v755_v5 }
  0x3a   :  { %620 = vmatpush3.bf16.msra.mxu0 %v619_v18 }
  0x3b   :  { %621 = vmatprep.subr.bf16.mxu0 %v755_v5  ;;  %641 = vmatpush3.bf16.msra.mxu1 %v640_v39 }
  0x3c   :  { %642 = vmatprep.subr.bf16.mxu1 %v755_v5 }
  0x3e   :  { %623 = vmatpush3.bf16.msra.mxu0 %v622_v21 }
  0x3f   :  { %624 = vmatprep.subr.bf16.mxu0 %v755_v5  ;;  %644 = vmatpush3.bf16.msra.mxu1 %v643_v42 }
  0x40   :  { %645 = vmatprep.subr.bf16.mxu1 %v755_v5 }
  0x42   :  { %626 = vmatpush3.bf16.msra.mxu0 %v625_v24 }
  0x43   :  { %627 = vmatprep.subr.bf16.mxu0 %v755_v5  ;;  %647 = vmatpush3.bf16.msra.mxu1 %v646_v45 }
  0x44   :  { %648 = vmatprep.subr.bf16.mxu1 %v755_v5 }
  0x46   :  { %629 = vmatpush3.bf16.msra.mxu0 %v628_v27 }
  0xa7   :  { %v59_v47 = vpop.permute.xlu0 %58 }
  0xa8   :  { %v850_v48 = vmul.f32 %v490_v46, %v59_v47 }
  0xaa   :  { %v80_v49 = vand.u32 2139095040, %v850_v48  ;;  %v77_v53 = vand.u32 2147483647, %v850_v48  ;;  %vm79_vm8 = vcmp.lt.s32.totalorder %v850_v48, 0 }
  0xac   :  { %v81_v50 = vshrl.u32 %v80_v49, 23  ;;  %v84_v56 = vand.u32 8388607, %v77_v53  ;;  %vm78_vm9 = vcmp.le.f32.partialorder %v77_v53, 0.7853982 }
  0xae   :  { %v492_v51 = vadd.s32 4294967169, %v81_v50  ;;  %v85_v12 = vor.u32 8388608, %v84_v56 }
  0xb0   :  { %v87_v52 = vadd.s32 1, %v492_v51  ;;  %v125_v26 = vshll.u32 %v85_v12, 8 }
  0xb2   :  { %vm88_vm1 = vcmp.gt.s32.totalorder %v87_v52, 0 }
  0xb3   :  { %v89_v54 = vsel %vm88_vm1, %v87_v52, 0  ;;  %vm169_vm1 = vweird.f32 %v850_v48 }
  0xb4   :  { %v91_v55 = vand.u32 31, %v89_v54  ;;  %v90_v58 = vshrl.u32 %v89_v54, 5 }
  0xb6   :  { %v92_v57 = vsub.s32 32, %v91_v55  ;;  %v94_v60 = vshll.u32 %v758_v59, %v91_v55  ;;  %v97_v62 = vshll.u32 %v759_v61, %v91_v55  ;;  %v100_v2 = vshll.u32 %v760_v0, %v91_v55 }
  0xb7   :  { %v103_v6 = vshll.u32 %v761_v3, %v91_v55  ;;  %v106_v9 = vshll.u32 %v762_v7, %v91_v55  ;;  %vm109_vm2 = vcmp.lt.s32.totalorder %v90_v58, 1  ;;  %vm112_vm3 = vcmp.lt.s32.totalorder %v90_v58, 4 }
  0xb8   :  { %v95_v63 = vshrl.u32 %v759_v61, %v92_v57  ;;  %v98_v1 = vshrl.u32 %v760_v0, %v92_v57  ;;  %v101_v4 = vshrl.u32 %v761_v3, %v92_v57  ;;  %v104_v8 = vshrl.u32 %v762_v7, %v92_v57 }
  0xb9   :  { %v107_v11 = vshrl.u32 %v763_v10, %v92_v57  ;;  %v93_v21 = vshrl.u32 %v758_v59, %v92_v57  ;;  %vm111_vm4 = vcmp.lt.s32.totalorder %v90_v58, 3  ;;  %vm110_vm5 = vcmp.lt.s32.totalorder %v90_v58, 2 }
  0xba   :  { %v96_v13 = vor.u32 %v95_v63, %v94_v60  ;;  %v99_v14 = vor.u32 %v98_v1, %v97_v62  ;;  %v102_v15 = vor.u32 %v101_v4, %v100_v2  ;;  %v105_v16 = vor.u32 %v104_v8, %v103_v6 }
  0xbb   :  { %v108_v17 = vor.u32 %v107_v11, %v106_v9  ;;  %v491_v9 = vld [vmem:[%s896_s2] ss:$0 sm:$0xff] }
  0xbc   :  { %v114_v18 = vsel %vm112_vm3, %v102_v15, 2102212464  ;;  %v117_v19 = vsel %vm109_vm2, %v96_v13, %v99_v14  ;;  %v121_v20 = vsel %vm109_vm2, %v99_v14, %v102_v15  ;;  %v118_v22 = vsel %vm112_vm3, %v105_v16, 920167782 }
  0xbd   :  { %v122_v23 = vsel %vm112_vm3, %v108_v17, 1326507024  ;;  %v119_v24 = vsel %vm111_vm4, %v102_v15, %v118_v22  ;;  %v113_v27 = vsel %vm109_vm2, %v93_v21, %v96_v13  ;;  %v115_v28 = vsel %vm111_vm4, %v99_v14, %v114_v18  ;;  %v392_v22 = vld [vmem:[#allocation5 + $0x60] sm:$0xff] }
  0xbe   :  { %v123_v25 = vsel %vm111_vm4, %v105_v16, %v122_v23  ;;  %v120_v29 = vsel %vm110_vm5, %v117_v19, %v119_v24  ;;  %v116_v35 = vsel %vm110_vm5, %v113_v27, %v115_v28  ;;  %vm75_vm10 = vcmp.gt.f32.partialorder %v491_v9, 0.5  ;;  %v393_v23 = vld [vmem:[#allocation5 + $0x68] sm:$0xff] }
  0xbf   :  { %v124_v30 = vsel %vm110_vm5, %v121_v20, %v123_v25  ;;  %v859_v33 = vmul.u32.u64.low %v125_v26, %v120_v29  ;;  %v860_v34 = vmul.u32.u64.high %v125_v26, %v120_v29, %v859_v33  ;;  %v132_v37 = vmul.u32 %v125_v26, %v116_v35  ;;  %v394_v25 = vld [vmem:[#allocation5 + $0x70] sm:$0xff] }
  0xc0   :  { %v856_v31 = vmul.u32.u64.low %v125_v26, %v124_v30  ;;  %v857_v32 = vmul.u32.u64.high %v125_v26, %v124_v30, %v856_v31  ;;  %v649_v24 = vpack.c.bf16 %v393_v23, %v392_v22  ;;  %v395_v26 = vld [vmem:[#allocation5 + $0x78] sm:$0xff] }
  0xc1   :  { %v135_v36 = vadd.s32 1, %v860_v34  ;;  %v652_v27 = vpack.c.bf16 %v395_v26, %v394_v25 }
  0xc2   :  { %vm134_vm6 = vc.u32 %v857_v32, %v859_v33  ;;  %v133_v50 = vadd.s32 %v859_v33, %v857_v32  ;;  %650 = vmatpush3.bf16.msra.mxu1 %v649_v24  ;;  %v501_v33 = vld [vmem:[%s900_s6] ss:$0 sm:$0xff] }
  0xc3   :  { %v136_v38 = vsel %vm134_vm6, %v135_v36, %v860_v34  ;;  %651 = vmatprep.subr.bf16.mxu1 %v755_v5 }
  0xc4   :  { %v137_v39 = vadd.s32 %v136_v38, %v132_v37 }
  0xc6   :  { %v138_v40 = vadd.s32 536870912, %v137_v39  ;;  %653 = vmatpush3.bf16.msra.mxu1 %v652_v27 }
  0xc8   :  { %v139_v41 = vshrl.u32 %v138_v40, 30 }
  0xca   :  { %v140_v42 = vshll.u32 %v139_v41, 30  ;;  %v163_v63 = vsub.s32 4, %v139_v41 }
  0xcc   :  { %v141_v43 = vsub.s32 %v137_v39, %v140_v42  ;;  %v164_v2 = vsel %vm79_vm8, %v163_v63, %v139_v41 }
  0xcd   :  { %v166_v4 = vsel %vm78_vm9, 0, %v164_v2 }
  0xce   :  { %v143_v44 = vsub.s32 0, %v141_v43  ;;  %v170_v6 = vadd.s32 3, %v166_v4  ;;  %v274_v8 = vand.u32 3, %v166_v4 }
  0xd0   :  { %v493_v45 = vmin.u32 %v143_v44, %v141_v43  ;;  %v171_v7 = vand.u32 3, %v170_v6  ;;  %vm279_vm12 = vcmp.eq.s32.totalorder %v274_v8, 2  ;;  %vm276_vm14 = vcmp.eq.s32.totalorder %v274_v8, 0 }
  0xd1   :  { %vm275_vm0 = vcmp.lt.s32.totalorder %v274_v8, 2 }
  0xd2   :  { %v145_v46 = vclz %v493_v45  ;;  %vm176_vm11 = vcmp.eq.s32.totalorder %v171_v7, 2  ;;  %vm173_vm13 = vcmp.eq.s32.totalorder %v171_v7, 0  ;;  %vm172_vm15 = vcmp.lt.s32.totalorder %v171_v7, 2 }
  0xd4   :  { %v494_v47 = vadd.s32 4294967294, %v145_v46 }
  0xd6   :  { %vm495_vm7 = vcmp.lt.s32.totalorder %v494_v47, 0 }
  0xd7   :  { %v148_v49 = vsel %vm495_vm7, 0, %v494_v47 }
  0xd8   :  { %v149_v51 = vsub.s32 32, %v148_v49  ;;  %v153_v52 = vsub.s32 4294967266, %v148_v49  ;;  %v150_v54 = vshll.u32 %v141_v43, %v148_v49 }
  0xda   :  { %v151_v55 = vshrl.u32 %v133_v50, %v149_v51  ;;  %v154_v56 = vadd.s32 127, %v153_v52 }
  0xdc   :  { %v152_v57 = vor.u32 %v151_v55, %v150_v54  ;;  %v155_v58 = vshll.u32 %v154_v56, 23 }
  0xde   :  { %v156_v59 = vor.u32 4788187, %v155_v58  ;;  %v159_v61 = vcvt.s32.f32 %v152_v57 }
  0xe0   :  { %v157_v60 = vand.u32 2147483647, %v156_v59 }
  0xe2   :  { %v160_v62 = vmul.f32 %v159_v61, %v157_v60 }
  0xe4   :  { %v161_v0 = vxor.u32 2147483648, %v160_v62 }
  0xe6   :  { %v162_v1 = vsel %vm79_vm8, %v161_v0, %v160_v62 }
  0xe7   :  { %v165_v3 = vsel %vm78_vm9, %v850_v48, %v162_v1  ;;  %v500_v48 = vld [vmem:[%s898_s4] ss:$0 sm:$0xff] }
  0xe8   :  { %674 = vcosq.f32 %v165_v3 }
  0xe9   :  { %676 = vsinq.f32 %v165_v3 }
  0xf2   :  { %v675_v10 = vpop.eup %674 }
  0xf3   :  { %v677_v11 = vpop.eup %676  ;;  %v177_v12 = vxor.u32 2147483648, %v675_v10 }
  0xf4   :  { %v174_v13 = vxor.u32 2147483648, %v677_v11 }
  0xf5   :  { %v178_v53 = vsel %vm176_vm11, %v177_v12, %v677_v11  ;;  %v281_v14 = vsel %vm279_vm12, %v177_v12, %v677_v11 }
  0xf6   :  { %v175_v15 = vsel %vm173_vm13, %v675_v10, %v174_v13  ;;  %v278_v16 = vsel %vm276_vm14, %v675_v10, %v174_v13 }
  0xf7   :  { %v179_v17 = vsel %vm172_vm15, %v175_v15, %v178_v53  ;;  %v282_v18 = vsel %vm275_vm0, %v278_v16, %v281_v14 }
  0xf8   :  { %v180_v19 = vsel %vm169_vm1, nan, %v179_v17  ;;  %v283_v20 = vsel %vm169_vm1, nan, %v282_v18 }
  0xf9   :  { %v284_v21 = vsel %vm75_vm10, %v180_v19, %v283_v20 }
  0xfa   :  { %569 = vmatmul.mubr.f32.vlgmr.msra.gmra.mrb[0].mxu0 %v284_v21 }
 0x1cd   :  { %v374_v28 = vpop.f32.mrb[0].mxu0 }
 0x1ce   :  { %v375_v29 = vadd.f32 %v500_v48, %v374_v28  ;;  %v570_v30 = vpop.f32.mrb[1].mxu0 }
 0x1d0   :  { %v378_v31 = vmul.f32 0.2, %v375_v29 }
 0x1d2   :  { %v379_v32 = vmax.f32 %v375_v29, %v378_v31 }
 0x1d4   :  { %604 = vmatmul.mubr.f32.vlgmr.msra.gmra.mrb[0].mxu1 %v379_v32 }
 0x2a7   :  { %v469_v5 = vpop.f32.mrb[0].mxu1 }
 0x2a8   :  { %v470_v34 = vadd.f32 %v501_v33, %v469_v5  ;;  %v605_v35 = vpop.f32.mrb[1].mxu1 }
 0x2aa   :  { %473 = vst [vmem:[#allocation7] sm:$0xff] %v470_v34 }
 0x2ab   :  { %733 = shalt.err (!%p730_p6)
}
 0x2ac   :  { %s734_s13 = scalar_lea.hbm %s901_s7, 128 }
 0x2ad   :  { %p735_p7 = scmp.ne.s32.totalorder %s901_s7, %s734_s13  ;;  %p738_p8 = scmp.lt.u32.totalorder %s734_s13, %s901_s7 }
 0x2af   :  { %p740_p9 = pnand %p738_p8, %p735_p7 }
 0x2b1   :  { %743 = shalt.err (!%p740_p9)
}
 0x2b2   :  { %483 = dma.vmem_to_hbm [thread:$0]  %s481_s10, 128, %s901_s7, [#allocation4]  }
 0x2b3   :  { %748 = dma.done.wait [#allocation4], 128  }
 0x2b4   :  { %749 = vsyncadd [#allocation4], 4294967168 }
 0x2b5   :  { %487 = vsyncpa [#allocation3], 1 }
 0x2b6   :  { %488 = vsyncpa [#allocation6], 1 }
 0x2b7   :  { %489 = vsyncpa [#allocation4], 1 }

</bundles_post_ra>
